<compile_context>
chip_gen: v6e
topology: v6e:2x2x1
jax: 0.10.0
libtpu: 0.0.40
codegen_flags: <defaults>
</compile_context>

<pallas_src>
import functools
import numpy as np
import jax
import jax.numpy as jnp
from jax.experimental import pallas as pl
from jax.experimental.pallas import tpu as pltpu


# ----------------------------------------------------------------------------
# Parameter setup (mirrors the provided torch __init__ exactly: sigma = 1.5,
# kernel_size = 2*round(4*sigma)+1 = 13, ka = kb = 6).
# ----------------------------------------------------------------------------
def _gaussian_1d(sigma=1.5):
    kernel_size = 2 * round(sigma * 4) + 1            # 13
    ka = kernel_size // 2                              # 6
    kb = ka - 1 if kernel_size % 2 == 0 else ka        # 6
    grid = np.arange(kernel_size, dtype=np.float64)
    mean = (kernel_size - 1) / 2.0
    g = np.exp(-((grid - mean) ** 2) / (2.0 * sigma ** 2))
    # outer(g_norm, g_norm) == kernel2d / sum(kernel2d)  (separable form)
    g = (g / g.sum()).astype(np.float32)
    return g, kernel_size, ka, kb


def _band_matrix(n_in, ka, g_norm, stride):
    """Banded G (n_out x n_in): G @ v == (zero-pad + valid 1D conv + [::stride])(v)."""
    K = len(g_norm)
    rows = np.arange(0, n_in, stride)
    M = np.zeros((len(rows), n_in), dtype=np.float32)
    for ri, r in enumerate(rows):
        lo = max(0, r - ka)
        hi = min(n_in, r - ka + K)
        for m in range(lo, hi):
            M[ri, m] = g_norm[ka + m - r]
    return M


def _vmem_capacity_bytes():
    try:
        info = pltpu.get_tpu_info()
        cap = getattr(info, "vmem_capacity_bytes", None)
        if cap:
            return int(cap)
    except Exception:
        pass
    return 64 * 1024 * 1024   # v7x-safe fallback (smallest VMEM of the three gens)


def _choose_bt(B, H, H_out, bt_max):
    """Planes per grid step: divisor of B (no padding pass), (8,.)-aligned blocks,
    within the VMEM budget, preferring >= 2 grid steps so both v7x TCs get work."""
    bt_max = max(1, min(bt_max, B))

    def aligned(d):
        return d == B or ((d * H) % 8 == 0 and (d * H_out) % 8 == 0)

    cands = [d for d in range(1, bt_max + 1) if B % d == 0 and aligned(d)]
    multi = [d for d in cands if B // d >= 2]
    if multi:
        return max(multi)
    if cands:
        return max(cands)
    # TODO(synk): pathological shapes (no aligned divisor fits the VMEM budget)
    # fall back to one full-batch block; fine for realistic N*C.
    return B


# ----------------------------------------------------------------------------
# Pallas kernel:  out_block = batched( Gr @ (X_block @ GcT) )
# ----------------------------------------------------------------------------
def _sep_gauss_kernel(gr_ref, gct_ref, x_ref, o_ref, *, bt, H, H_out):
    # gr_ref: (H_out, H)   gct_ref: (W, W_out_pad)
    # x_ref : (bt*H, W)    o_ref  : (bt*H_out, W_out_pad)
    wo = gct_ref.shape[1]
    # (1) Column (W) contraction: ONE matmul with M = bt*H (fills the MXU rows).
    xf = x_ref[...].astype(jnp.float32)   # in-VMEM upcast; no extra HBM pass
    t = jnp.dot(xf, gct_ref[...], preferred_element_type=jnp.float32)  # (bt*H, wo)
    t = t.reshape(bt, H, wo)
    # (2) Row (H) contraction: one batched matmul (no per-plane Python unroll).
    grb = jnp.broadcast_to(gr_ref[...][None], (bt, H_out, H))
    u = jax.lax.dot_general(
        grb, t,
        dimension_numbers=(((2,), (1,)), ((0,), (0,))),
        preferred_element_type=jnp.float32)                            # (bt, H_out, wo)
    o_ref[...] = u.reshape(bt * H_out, wo).astype(o_ref.dtype)


def anti_alias_interpolation2d(x, channels, scale):
    """JAX/Pallas equivalent of AntiAliasInterpolation2d.forward. x: (N, C, H, W)."""
    if scale == 1.0:
        return x

    g, _K, ka, _kb = _gaussian_1d(sigma=1.5)
    s = int(1.0 / scale)

    N, C, H, W = x.shape
    assert C == channels
    B = N * C

    # Pad + separable conv + subsample folded into banded matrices (trace-time consts).
    Gr = _band_matrix(H, ka, g, s)                    # (H_out, H)
    GcT = _band_matrix(W, ka, g, s).T                 # (W, W_out)
    H_out, W_out = Gr.shape[0], GcT.shape[1]

    # Lane-dense output: pad W_out (zero columns of GcT) up to a multiple of 128
    # so output stores are full-lane vst; sliced off in the wrapper.
    W_out_pad = ((W_out + 127) // 128) * 128
    if W_out_pad != W_out:
        GcT = np.pad(GcT, ((0, 0), (0, W_out_pad - W_out)))
    Gr = jnp.asarray(Gr, dtype=jnp.float32)
    GcT = jnp.asarray(GcT, dtype=jnp.float32)

    # VMEM-aware block sizing (double-buffered I/O blocks + f32 temporaries).
    itemsize = jnp.dtype(x.dtype).itemsize
    cap = _vmem_capacity_bytes()
    budget = int(cap * 0.7)                           # ~45 MiB on v7x, ~90 MiB on v5e/v6e
    const_bytes = 2 * 4 * (H_out * H + W * W_out_pad)
    per_plane = (2 * itemsize * (H * W + H_out * W_out_pad)            # dbl-buffered I/O
                 + 4 * (H * W + H * W_out_pad + H_out * H + H_out * W_out_pad))  # f32 temps
    bt_max = max(1, (budget - const_bytes - (2 << 20)) // per_plane)
    bt = _choose_bt(B, H, H_out, bt_max)

    need = const_bytes + bt * per_plane + (2 << 20)
    vmem_limit = int(min(cap * 0.9, max(need, 32 * 1024 * 1024)))

    x2d = x.reshape(B * H, W)                         # metadata-only view, no HBM pass

    flops = 2 * B * (H * W * W_out_pad + H_out * H * W_out_pad)
    bytes_accessed = (itemsize * B * (H * W + H_out * W_out_pad)
                      + 4 * (H_out * H + W * W_out_pad))

    kernel_fn = functools.partial(_sep_gauss_kernel, bt=bt, H=H, H_out=H_out)

    out2d = pl.pallas_call(
        kernel_fn,
        out_shape=jax.ShapeDtypeStruct((B * H_out, W_out_pad), x.dtype),
        grid_spec=pltpu.PrefetchScalarGridSpec(
            num_scalar_prefetch=0,
            grid=(B // bt,),
            in_specs=[
                pl.BlockSpec((H_out, H), lambda b: (0, 0)),        # Gr   (VMEM-resident)
                pl.BlockSpec((W, W_out_pad), lambda b: (0, 0)),    # GcT  (VMEM-resident)
                pl.BlockSpec((bt * H, W), lambda b: (b, 0)),       # bt input planes
            ],
            out_specs=pl.BlockSpec((bt * H_out, W_out_pad), lambda b: (b, 0)),
        ),
        compiler_params=pltpu.CompilerParams(
            dimension_semantics=("parallel",),
            vmem_limit_bytes=vmem_limit,
        ),
        cost_estimate=pl.CostEstimate(flops=flops, transcendentals=0,
                                      bytes_accessed=bytes_accessed),
    )(Gr, GcT, x2d)

    if W_out_pad != W_out:
        out2d = out2d.reshape(B, H_out, W_out_pad)[:, :, :W_out]
    return out2d.reshape(N, C, H_out, W_out)


# ----------------------------------------------------------------------------
# Pure-JAX reference (matches the torch forward: pad -> grouped conv -> stride)
# ----------------------------------------------------------------------------
def reference_anti_alias(x, channels, scale):
    if scale == 1.0:
        return x
    g, _K, ka, kb = _gaussian_1d(sigma=1.5)
    kernel2d = np.outer(g, g).astype(np.float32)
    s = int(1.0 / scale)
    w = jnp.asarray(kernel2d)[None, None]                 # (1,1,K,K)
    w = jnp.tile(w, (channels, 1, 1, 1))                  # (C,1,K,K)
    xp = jnp.pad(x, ((0, 0), (0, 0), (ka, kb), (ka, kb)))
    out = jax.lax.conv_general_dilated(
        xp, w, window_strides=(1, 1), padding="VALID",
        dimension_numbers=("NCHW", "OIHW", "NCHW"),
        feature_group_count=channels)
    return out[:, :, ::s, ::s]


if __name__ == "__main__":
    key = jax.random.PRNGKey(0)
    N, C, H, W = 2, 4, 16, 16
    scale = 0.5
    x = jax.random.normal(key, (N, C, H, W), dtype=jnp.float32)

    out = jax.block_until_ready(anti_alias_interpolation2d(x, channels=C, scale=scale))
    ref = jax.block_until_ready(reference_anti_alias(x, channels=C, scale=scale))

    assert out.shape == (N, C, H // 2, W // 2), out.shape
    err = float(jnp.max(jnp.abs(out - ref)))
    assert err < 1e-4, err

    print("KERNEL_OK")
</pallas_src>

<mosaic_0001>
module attributes {stable_mosaic.version = 11 : i64} {
  func.func @_sep_gauss_kernel(%arg0: i32, %arg1: memref<8x16xf32, #tpu.memory_space<vmem>>, %arg2: memref<16x128xf32, #tpu.memory_space<vmem>>, %arg3: memref<64x16xf32, #tpu.memory_space<vmem>>, %arg4: memref<32x128xf32, #tpu.memory_space<vmem>>) attributes {dimension_semantics = [#tpu.dimension_semantics<parallel>], iteration_bounds = array<i64: 2>, scalar_prefetch = 0 : i64, scratch_operands = 0 : i64, tpu.core_type = #tpu.core_type<tc>, window_params = [{pipeline_mode = #tpu.pipeline_mode<synchronous>, transform_indices = @transform_0, window_bounds = array<i64: 8, 16>}, {pipeline_mode = #tpu.pipeline_mode<synchronous>, transform_indices = @transform_1, window_bounds = array<i64: 16, 128>}, {transform_indices = @transform_2, window_bounds = array<i64: 64, 16>}, {transform_indices = @transform_3, window_bounds = array<i64: 32, 128>}]} {
    %c0 = arith.constant 0 : index
    %c0_0 = arith.constant 0 : index
    %0 = vector.load %arg3[%c0, %c0_0] : memref<64x16xf32, #tpu.memory_space<vmem>>, vector<64x16xf32>
    %c0_1 = arith.constant 0 : index
    %c0_2 = arith.constant 0 : index
    %1 = vector.load %arg2[%c0_1, %c0_2] : memref<16x128xf32, #tpu.memory_space<vmem>>, vector<16x128xf32>
    %cst = arith.constant dense<0.000000e+00> : vector<64x128xf32>
    %2 = tpu.matmul %0, %1, %cst {dimension_numbers = #tpu.dot_dimension_numbers<[1], [0], [0], [1], [0, 0, 1, 1], [], []>} : vector<64x16xf32>, vector<16x128xf32>, vector<64x128xf32> -> vector<64x128xf32>
    %3 = vector.shape_cast %2 : vector<64x128xf32> to vector<4x16x128xf32>
    %c0_3 = arith.constant 0 : index
    %c0_4 = arith.constant 0 : index
    %4 = vector.load %arg1[%c0_3, %c0_4] : memref<8x16xf32, #tpu.memory_space<vmem>>, vector<8x16xf32>
    %5 = vector.shape_cast %4 : vector<8x16xf32> to vector<1x8x16xf32>
    %6 = vector.shape_cast %5 : vector<1x8x16xf32> to vector<1x8x16xf32>
    %7 = vector.broadcast %6 : vector<1x8x16xf32> to vector<4x8x16xf32>
    %cst_5 = arith.constant dense<0.000000e+00> : vector<4x8x128xf32>
    %8 = tpu.matmul %7, %3, %cst_5 {dimension_numbers = #tpu.dot_dimension_numbers<[2], [1], [1], [2], [0, 0, 0, 1, 1, 2], [0], [0]>} : vector<4x8x16xf32>, vector<4x16x128xf32>, vector<4x8x128xf32> -> vector<4x8x128xf32>
    %9 = vector.shape_cast %8 : vector<4x8x128xf32> to vector<32x128xf32>
    %c0_6 = arith.constant 0 : index
    %c0_7 = arith.constant 0 : index
    %10 = vector.load %arg4[%c0_6, %c0_7] : memref<32x128xf32, #tpu.memory_space<vmem>>, vector<32x128xf32>
    tpu.vector_store %arg4[%c0_6, %c0_7], %9 {strides = array<i32>} : memref<32x128xf32, #tpu.memory_space<vmem>>, vector<32x128xf32>,
    return
  }
  func.func @transform_0(%arg0: i32) -> (i32, i32) {
    %c0_i32 = arith.constant 0 : i32
    %c0_i32_0 = arith.constant 0 : i32
    %c0_i32_1 = arith.constant 0 : i32
    return %c0_i32, %c0_i32_0 : i32, i32
  }
  func.func @transform_1(%arg0: i32) -> (i32, i32) {
    %c0_i32 = arith.constant 0 : i32
    %c0_i32_0 = arith.constant 0 : i32
    %c0_i32_1 = arith.constant 0 : i32
    return %c0_i32, %c0_i32_0 : i32, i32
  }
  func.func @transform_2(%arg0: i32) -> (i32, i32) {
    %c0_i32 = arith.constant 0 : i32
    %c0_i32_0 = arith.constant 0 : i32
    return %arg0, %c0_i32 : i32, i32
  }
  func.func @transform_3(%arg0: i32) -> (i32, i32) {
    %c0_i32 = arith.constant 0 : i32
    %c0_i32_0 = arith.constant 0 : i32
    return %arg0, %c0_i32 : i32, i32
  }
}

</mosaic_0001>

<bundles_post_ra>
// kernel: tpu_custom_call.1
= control target key start
LH: loop header
LB: loop body
LE: loop exit
PB: predicated region body
PF: predicated region fallthrough
CT: control target
= control target key end

     0   :  { %8 = vsyncpa [#allocation3], 0  ;;  %s1023_s0 = inlined_call_operand.vmem [shape: f32[8,16], index: 0, kind: input, shape index: {}]   ;;  %s1024_s1 = inlined_call_operand.vmem [shape: f32[16,128], index: 1, kind: input, shape index: {}]   ;;  %s1025_s2 = inlined_call_operand.vmem [shape: f32[128,16], index: 2, kind: input, shape index: {}]   ;;  %s1026_s3 = inlined_call_operand.hbm [shape: f32[64,128], index: 3, kind: output, shape index: {}]  }
   0x1   :  { %10 = vsyncpa [#allocation3 + $0x1], 0  ;;  %s897_s12 = smov 0   ;;  %s899_s13 = smov 0  }
   0x2   :  { %s901_s14 = smov 0   ;;  %s903_s15 = smov 0  }
   0x3 LB: > { %s918_s16 = sadd.s32 4294967295, %s870_s15   ;;  %s676_s17 = sadd.s32 4294967294, %s870_s15   ;;  %s870_s15 = sphi %s903_s15, %s1032_s15   ;;  %s866_s14 = sphi %s901_s14, %s1031_s14   ;;  %s862_s13 = sphi %s899_s13, %s1030_s13   ;;  %s858_s12 = sphi %s897_s12, %s1029_s12  }
   0x4   : > { %s922_s18 = sadd.s32 1, %s870_s15   ;;  %s91_s19 = sadd.s32 1, %s866_s14 }
   0x5   : > { %s88_s20 = ssub.s32 %s870_s15, %s922_s18  ;;  %p101_p0 = scmp.ne.s32.totalorder %s866_s14, %s862_s13 }
   0x6   : > { %p89_p1 = scmp.eq.s32.totalorder %s88_s20, 0  ;;  %p102_p2 = scmp.eq.s32.totalorder %s918_s16, 1 }
   0x7   : > { %p107_p3 = scmp.ne.s32.totalorder %s862_s13, %s858_s12  ;;  %p108_p4 = scmp.eq.s32.totalorder %s676_s17, 1 }
   0x8   : > { %s933_s21 = scalar_select %p89_p1, %s866_s14, %s91_s19  }
   0x9   : > { %p935_p5 = por %p102_p2, %p101_p0  ;;  %p939_p6 = por %p108_p4, %p107_p3 }
   0xa   : > { %p679_p7 = scmp.ge.s32.totalorder %s870_s15, 1  ;;  %p141_p8 = scmp.lt.s32.totalorder %s870_s15, 3 }
   0xc   : > { %p142_p9 = pnand %p679_p7, %p141_p8 }
   0xd   : > { %s681_s28 = sshll.u32 (!%p142_p9), %s918_s16, 3  ;;  %s162_s8 = sand.u32 (!%p142_p9), 1, %s862_s13  }
   0xe   : > { %145 = sbr.rel (%p142_p9) target bundleno = 440 (0x1b8), region = 32  ;;  %p166_p10 = scmp.lt.s32.totalorder (!%p142_p9), %s681_s28, 15 }
   0xf   : > { %s680_s9 = sshll.u32 (!%p142_p9), %s162_s8, 5  ;;  %s700_s17 = sshll.u32 (!%p142_p9), %s918_s16, 9 }
  0x10   : > { %s164_s10 = scalar_lea.vmem (!%p142_p9), [#allocation2], %s680_s9  ;;  %s981_s24 = scalar_lea.hbm (!%p142_p9), %s1026_s3, %s700_s17 }
  0x11   : > { %s614_s11 = sshll.u32 (!%p142_p9), %s164_s10, 4  ;;  %s983_s25 = scalar_lea.sflag (!%p142_p9), [#allocation3], %s162_s8  ;;  %s976_s11 = int_to_ptr.vmem [resolvable:$true] %s614_s11 }
  0x12   : > { %s810_s26 = scalar_lea.vmem (!%p142_p9), %s976_s11, 512  ;;  %s874_s16 = smov (!%p142_p9), [#allocation2]  }
  0x13   : > { %v181_v0 = vld [vmem:[%s1024_s1 + $0x8] sm:$0xff]  ;;  %v180_v1 = vld [vmem:[%s1024_s1] sm:$0xff]  ;;  %s1034_s28 = smov (!%p166_p10, %s681_s28), 15  ;;  %vm182_vm0 = vcmask 130048   ;;  %v872_v10 = vmov 0.0   ;;  %vm873_vm1 = vmmov 0   ;;  %p811_p11 = scmp.ne.s32.totalorder %s976_s11, %s810_s26 }
  0x14   : > { %723 = vmatprep.subr.mxu0 %v181_v0  ;;  %s682_s29 = sshll.u32 %s1034_s28, 3  ;;  %739 = vmatprep.subr.mxu1 %v872_v10  ;;  %v312_v12 = vld [vmem:[%s1023_s0] sm:$0xff]  ;;  %s814_s27 = sshll.u32 %s874_s16, 4  ;;  %s815_s27 = int_to_ptr.vmem [resolvable:$false] %s814_s27 }
  0x15   : > { %724 = vmatpush3.msra.mxu0 %v181_v0  ;;  %s169_s5 = scalar_lea.vmem %s1025_s2, %s682_s29  ;;  %743 = vmatprep.mubr.msk.f32.mxu1 %vm873_vm1, %v872_v10  ;;  %p812_p12 = pnand %p811_p11, %p935_p5 }
  0x16   : > { %725 = vmatprep.subr.mxu0 %v180_v1  ;;  %v172_v2 = vld [vmem:[%s169_s5] sm:$0xff]  ;;  %v173_v3 = vld [vmem:[%s169_s5 + $0x8] sm:$0xff]  ;;  %v174_v4 = vld [vmem:[%s169_s5 + $0x10] sm:$0xff]  ;;  %s816_s28 = scalar_lea.vmem %s815_s27, 1024  ;;  %p817_p0 = scmp.lt.s32.totalorder %s976_s11, %s815_s27 }
  0x17   : > { %726 = vmatpush3.msra.mxu0 %v180_v1  ;;  %727 = vmatprep.mubr.msk.f32.mxu0 %vm182_vm0, %v172_v2  ;;  %v175_v5 = vld [vmem:[%s169_s5 + $0x18] sm:$0xff]  ;;  %v176_v6 = vld [vmem:[%s169_s5 + $0x20] sm:$0xff]  ;;  %v177_v7 = vld [vmem:[%s169_s5 + $0x28] sm:$0xff]  ;;  %p813_p13 = pneg %p812_p12  ;;  %p818_p1 = scmp.lt.s32.totalorder %s816_s28, %s810_s26 }
  0x18   : > { %728 = vmatmul.mubr.msk.f32.vlgmr.msra.gmra.mxu0 %vm182_vm0, %v173_v3  ;;  %v178_v8 = vld [vmem:[%s169_s5 + $0x30] sm:$0xff]  ;;  %v179_v9 = vld [vmem:[%s169_s5 + $0x38] sm:$0xff] }
  0x19   : > { %730 = vmatprep.mubr.msk.f32.mxu0 %vm182_vm0, %v174_v4  ;;  %p819_p2 = por %p818_p1, %p817_p0 }
  0x1b   : > { %p820_p3 = pnand %p819_p2, %p813_p13 }
  0x1c   : > { %731 = vmatmul.mubr.msk.f32.gmra.mxu0 %vm182_vm0, %v175_v5 }
  0x1d   : > { %733 = vmatprep.mubr.msk.f32.mxu0 %vm182_vm0, %v176_v6 }
  0x20   : > { %734 = vmatmul.mubr.msk.f32.gmra.mxu0 %vm182_vm0, %v177_v7 }
  0x21   : > { %736 = vmatprep.mubr.msk.f32.mxu0 %vm182_vm0, %v178_v8 }
  0x24   : > { %737 = vmatmul.mubr.msk.f32.gmra.mxu0 %vm182_vm0, %v179_v9 }
  0xd8   : > { %v729_v11 = vpop.f32.mrf.mxu0 }
  0xd9   : > { %740 = vmatpush3.msra.mxu1 %v729_v11 }
  0xda   : > { %v273_v13 = vpop.f32.mrf.mxu0  ;;  %741 = vmatprep.subr.mxu1 %v872_v10 }
  0xdb   : > { %742 = vmatpush3.msra.mxu1 %v273_v13 }
  0xdc   : > { %v732_v14 = vpop.f32.mrf.mxu0  ;;  %744 = vmatmul.mubr.msk.f32.vlgmr.msra.gmra.mxu1 %vm182_vm0, %v312_v12  ;;  %746 = vmatprep.subr.mxu1 %v872_v10 }
  0xdd   : > { %747 = vmatpush3.msra.mxu1 %v732_v14  ;;  %750 = vmatprep.mubr.msk.f32.mxu1 %vm873_vm1, %v872_v10 }
  0xde   : > { %v283_v15 = vpop.f32.mrf.mxu0  ;;  %748 = vmatprep.subr.mxu1 %v872_v10 }
  0xdf   : > { %749 = vmatpush3.msra.mxu1 %v283_v15 }
  0xe0   : > { %v735_v16 = vpop.f32.mrf.mxu0  ;;  %751 = vmatmul.mubr.msk.f32.vlgmr.msra.gmra.mxu1 %vm182_vm0, %v312_v12  ;;  %753 = vmatprep.subr.mxu1 %v872_v10 }
  0xe1   : > { %754 = vmatpush3.msra.mxu1 %v735_v16  ;;  %757 = vmatprep.mubr.msk.f32.mxu1 %vm873_vm1, %v872_v10 }
  0xe2   : > { %v293_v17 = vpop.f32.mrf.mxu0  ;;  %755 = vmatprep.subr.mxu1 %v872_v10 }
  0xe3   : > { %756 = vmatpush3.msra.mxu1 %v293_v17 }
  0xe4   : > { %v738_v18 = vpop.f32.mrf.mxu0  ;;  %758 = vmatmul.mubr.msk.f32.vlgmr.msra.gmra.mxu1 %vm182_vm0, %v312_v12  ;;  %760 = vmatprep.subr.mxu1 %v872_v10 }
  0xe5   : > { %761 = vmatpush3.msra.mxu1 %v738_v18  ;;  %764 = vmatprep.mubr.msk.f32.mxu1 %vm873_vm1, %v872_v10 }
  0xe6   : > { %v303_v19 = vpop.f32.mrf.mxu0  ;;  %762 = vmatprep.subr.mxu1 %v872_v10 }
  0xe7   : > { %763 = vmatpush3.msra.mxu1 %v303_v19 }
  0xe8   : > { %765 = vmatmul.mubr.msk.f32.vlgmr.msra.gmra.mxu1 %vm182_vm0, %v312_v12 }
 0x19c   : > { %v382_v20 = vpop.f32.mrf.mxu1 }
 0x19d   : > { %596 = vst [vmem:[%s164_s10] sm:$0xff] %v382_v20 }
 0x19e   : > { %v745_v21 = vpop.f32.mrf.mxu1 }
 0x1a0   : > { %v452_v22 = vpop.f32.mrf.mxu1 }
 0x1a1   : > { %597 = vst [vmem:[%s164_s10 + $0x8] sm:$0xff] %v452_v22 }
 0x1a2   : > { %v752_v23 = vpop.f32.mrf.mxu1 }
 0x1a4   : > { %v522_v24 = vpop.f32.mrf.mxu1 }
 0x1a5   : > { %598 = vst [vmem:[%s164_s10 + $0x10] sm:$0xff] %v522_v24 }
 0x1a6   : > { %v759_v25 = vpop.f32.mrf.mxu1 }
 0x1a8   : > { %v592_v26 = vpop.f32.mrf.mxu1 }
 0x1a9   : > { %599 = vst [vmem:[%s164_s10 + $0x18] sm:$0xff] %v592_v26 }
 0x1aa   : > { %v766_v27 = vpop.f32.mrf.mxu1 }
 0x1ab   : > { %823 = shalt.err (!%p820_p3)
}
 0x1ac   : > { %s824_s29 = scalar_lea.hbm %s981_s24, 512  ;;  %s828_s5 = scalar_lea.hbm %s1026_s3, 1024 }
 0x1ad   : > { %p825_p4 = scmp.ne.s32.totalorder %s981_s24, %s824_s29  ;;  %p829_p9 = scmp.lt.s32.totalorder %s981_s24, %s1026_s3 }
 0x1ae   : > { %p830_p10 = scmp.lt.s32.totalorder %s828_s5, %s824_s29 }
 0x1af   : > { %p826_p7 = pnand %p825_p4, %p935_p5 }
 0x1b0   : > { %p831_p11 = por %p830_p10, %p829_p9 }
 0x1b1   : > { %p827_p8 = pneg %p826_p7 }
 0x1b3   : > { %p832_p12 = pnand %p831_p11, %p827_p8 }
 0x1b5   : > { %835 = shalt.err (!%p832_p12)
}
 0x1b6   : > { %s875_s8 = smov 128   ;;  %s876_s9 = smov 8  }
 0x1b7   : > { %767 = dma.vmem_to_hbm [thread:$0]  (%p935_p5), %s976_s11, 512, %s981_s24, %s983_s25, %s875_s8, %s875_s8, %s876_s9  }
 0x1b8 PF: > { %p773_p13 = scmp.ge.s32.totalorder %s870_s15, 2  ;;  %s629_s10 = sand.u32 1, %s858_s12  }
 0x1b9   : > { %s630_s17 = scalar_lea.sflag [#allocation3], %s629_s10 }
 0x1ba   : > { %p770_p0 = pnand %p773_p13, %p939_p6 }
 0x1bc   : > { %p771_p1 = pneg %p770_p0 }
 0x1be   : > { %853 = dma.done.wait (%p771_p1), %s630_s17, 512  }
 0x1bf   : > { %855 = vsyncadd (%p771_p1), %s630_s17, 4294966784  ;;  %p13_p2 = scmp.ge.s32.totalorder %s922_s18, 4   ;;  %s1029_s12 = smov %s862_s13 }
 0x1c0   : > { %s1030_s13 = smov %s866_s14  ;;  %s1031_s14 = smov %s933_s21 }
 0x1c1   : > { %s1032_s15 = smov %s922_s18  ;;  %15 = sbr.rel (!%p13_p2) target bundleno = 3 (0x3), region = 67 }
 0x1c6   :  { %635 = vsyncpa [#allocation3], 1 }
 0x1c7   :  { %637 = vsyncpa [#allocation3 + $0x1], 1 }

</bundles_post_ra>
